<compile_context>
chip_gen: v7x
topology: tpu7x:2x2x1
jax: 0.10.0
libtpu: 0.0.40
codegen_flags: <defaults>
</compile_context>

<pallas_src>
import functools
import math

import jax
import jax.numpy as jnp
from jax.experimental import pallas as pl
from jax.experimental.pallas import tpu as pltpu


def _softmax1_kernel(x_ref, o_ref, *, red_axis, compute_dtype):
    x = x_ref[...].astype(compute_dtype)
    x = x - jnp.max(x, axis=red_axis, keepdims=True)
    e = jnp.exp(x)
    # Row sum accumulated in f32 regardless of the compute dtype.
    s = jnp.sum(e.astype(jnp.float32), axis=red_axis, keepdims=True)
    # PyTorch precedence: exp(x-max)/1 + sum(exp(x-max)) == e + s.
    o_ref[...] = (e + s.astype(compute_dtype)).astype(o_ref.dtype)


def _vmem_budgets():
    """(tile_budget_bytes, vmem_limit_bytes), derived from physical VMEM."""
    phys = None
    try:
        phys = getattr(pltpu.get_tpu_info(), "vmem_capacity_bytes", None)
    except Exception:
        phys = None
    if not phys or phys < (16 << 20):
        phys = 64 << 20                       # v7x-safe fallback
    vmem_limit = int(phys * 3 // 4)           # 128 MiB -> 96 MiB ; 64 MiB -> 48 MiB
    tile_budget = vmem_limit // 2             # per-step in+out (2x buffered) + temps
    return tile_budget, vmem_limit


def _round_down(v, m):
    return max(m, (v // m) * m)


def _lastdim_call(xf, compute_dtype, tile_budget, vmem_limit):
    """Reduction over the last (lane) axis; xf is (R, D)."""
    R, D = xf.shape
    itemsize = jnp.dtype(xf.dtype).itemsize
    c_itemsize = jnp.dtype(compute_dtype).itemsize
    sublane = {4: 8, 2: 16, 1: 32}.get(itemsize, 8)

    # Per-row pipeline footprint: double-buffered in + out (native dtype) plus
    # ~2 compute-dtype temps (x, e) for the in-kernel working set.
    bytes_per_row = D * (2 * 2 * itemsize + 2 * c_itemsize)
    # TODO(synk): if even a sublane-height block exceeds the budget (very
    # large D), split D over an "arbitrary" grid axis with an online
    # running-max / rescaled-sum accumulator instead of one giant block.
    ts = _round_down(tile_budget // max(bytes_per_row, 1), sublane)

    # Megacore: keep >=2 (ideally 4) blocks on the parallel axis so both v7x
    # TensorCores stream HBM.  Near-zero cost on 1-TC chips.
    min_blocks = 4 if R >= 4 * sublane else (2 if R >= 2 * sublane else 1)
    if min_blocks > 1:
        ts = min(ts, _round_down(-(-R // min_blocks), sublane))

    if R <= ts:
        TS, grid = R, (1,)
    else:
        TS, grid = ts, (pl.cdiv(R, ts),)

    kernel = functools.partial(_softmax1_kernel, red_axis=-1,
                               compute_dtype=compute_dtype)
    return pl.pallas_call(
        kernel,
        out_shape=jax.ShapeDtypeStruct((R, D), xf.dtype),
        grid_spec=pltpu.PrefetchScalarGridSpec(
            num_scalar_prefetch=0,
            grid=grid,
            in_specs=[pl.BlockSpec((TS, D), lambda r: (r, 0))],
            out_specs=pl.BlockSpec((TS, D), lambda r: (r, 0)),
        ),
        compiler_params=pltpu.CompilerParams(
            dimension_semantics=("parallel",),
            vmem_limit_bytes=vmem_limit,
        ),
    )(xf)


def _middim_call(x3, compute_dtype, tile_budget, vmem_limit):
    """Reduction over the middle (sublane) axis; x3 is (P, D, S).
    Avoids the host-side transpose (and its 2 extra HBM passes) for dim != -1."""
    P, D, S = x3.shape
    itemsize = jnp.dtype(x3.dtype).itemsize
    c_itemsize = jnp.dtype(compute_dtype).itemsize
    bpe = 2 * 2 * itemsize + 2 * c_itemsize      # pipeline bytes per element

    # Lane tile: multiple of 128, or the full extent S (always legal).
    lane_cols = tile_budget // max(D * bpe, 1)
    if lane_cols >= S or S <= 128:
        TS = S
    else:
        TS = max(128, (lane_cols // 128) * 128)
    # TODO(synk): if even (1, D, min(128, S)) exceeds the budget, split D over
    # an "arbitrary" grid axis with an online accumulator.
    TP = max(1, tile_budget // max(D * TS * bpe, 1))

    n_lane_blocks = -(-S // TS)
    if n_lane_blocks == 1:
        # Megacore: give the P axis >=2 (ideally 4) blocks when possible.
        min_blocks = 4 if P >= 4 else (2 if P >= 2 else 1)
        if min_blocks > 1:
            TP = min(TP, -(-P // min_blocks))
    TP = max(1, min(TP, P))
    grid = (pl.cdiv(P, TP), pl.cdiv(S, TS))

    kernel = functools.partial(_softmax1_kernel, red_axis=1,
                               compute_dtype=compute_dtype)
    return pl.pallas_call(
        kernel,
        out_shape=jax.ShapeDtypeStruct((P, D, S), x3.dtype),
        grid_spec=pltpu.PrefetchScalarGridSpec(
            num_scalar_prefetch=0,
            grid=grid,
            in_specs=[pl.BlockSpec((TP, D, TS), lambda p, s: (p, 0, s))],
            out_specs=pl.BlockSpec((TP, D, TS), lambda p, s: (p, 0, s)),
        ),
        compiler_params=pltpu.CompilerParams(
            dimension_semantics=("parallel", "parallel"),
            vmem_limit_bytes=vmem_limit,
        ),
    )(x3)


def softmax1(x, dim=-1):
    """Softmax1 over axis `dim` of `x`: exp(x - max) + sum(exp(x - max))."""
    ndim = x.ndim
    axis = dim % ndim
    shape = x.shape

    # bf16 stays bf16 end-to-end (VPU/EUP bf16-native on v6e/v7x; still correct
    # on v5e via internal upcast).  Everything else computes in f32.
    compute_dtype = jnp.bfloat16 if x.dtype == jnp.bfloat16 else jnp.float32
    tile_budget, vmem_limit = _vmem_budgets()

    if axis == ndim - 1:
        D = shape[-1]
        R = math.prod(shape[:-1]) if ndim > 1 else 1
        out = _lastdim_call(x.reshape(R, D), compute_dtype, tile_budget, vmem_limit)
    else:
        P = math.prod(shape[:axis]) if axis > 0 else 1
        D = shape[axis]
        S = math.prod(shape[axis + 1:])
        out = _middim_call(x.reshape(P, D, S), compute_dtype, tile_budget, vmem_limit)
    return out.reshape(shape)


def softmax1_ref(x, dim=-1):
    x = x - jnp.max(x, axis=dim, keepdims=True)
    return jnp.exp(x) / 1 + jnp.sum(jnp.exp(x), axis=dim, keepdims=True)


if __name__ == "__main__":
    key = jax.random.PRNGKey(0)
    k1, k2, k3, k4 = jax.random.split(key, 4)

    # Case 1: canonical small shape (batch=2, seq=8, hidden=128), dim=-1.
    x1 = jax.random.normal(k1, (2, 8, 128), dtype=jnp.float32)
    out1 = softmax1(x1)
    jax.block_until_ready(out1)
    assert out1.shape == x1.shape and out1.dtype == x1.dtype
    assert jnp.allclose(out1, softmax1_ref(x1), atol=1e-5, rtol=1e-5), "case 1 mismatch"

    # Case 2: multi-block parallel row grid with a masked partial last block.
    x2 = jax.random.normal(k2, (2, 200, 128), dtype=jnp.float32)
    out2 = softmax1(x2)
    jax.block_until_ready(out2)
    assert jnp.allclose(out2, softmax1_ref(x2), atol=1e-5, rtol=1e-5), "case 2 mismatch"

    # Case 3: reduction over a non-last axis (sublane reduction, no transpose).
    x3 = jax.random.normal(k3, (8, 64, 40), dtype=jnp.float32)
    out3 = softmax1(x3, dim=1)
    jax.block_until_ready(out3)
    assert out3.shape == x3.shape and out3.dtype == x3.dtype
    assert jnp.allclose(out3, softmax1_ref(x3, dim=1), atol=1e-5, rtol=1e-5), "case 3 mismatch"

    # Case 4: bf16 I/O with bf16 compute + f32 row-sum accumulation.
    x4 = jax.random.normal(k4, (4, 16, 256), dtype=jnp.bfloat16)
    out4 = softmax1(x4)
    jax.block_until_ready(out4)
    assert out4.shape == x4.shape and out4.dtype == jnp.bfloat16
    ref4 = softmax1_ref(x4.astype(jnp.float32))
    assert jnp.allclose(out4.astype(jnp.float32), ref4, atol=5e-2, rtol=5e-2), "case 4 mismatch"

    print("KERNEL_OK")
</pallas_src>

<mosaic_0001>
module attributes {stable_mosaic.version = 11 : i64} {
  func.func @_softmax1_kernel(%arg0: i32, %arg1: memref<8x128xf32, #tpu.memory_space<vmem>>, %arg2: memref<8x128xf32, #tpu.memory_space<vmem>>) attributes {dimension_semantics = [#tpu.dimension_semantics<parallel>], iteration_bounds = array<i64: 2>, scalar_prefetch = 0 : i64, scratch_operands = 0 : i64, tpu.core_type = #tpu.core_type<tc>, window_params = [{transform_indices = @transform_0, window_bounds = array<i64: 8, 128>}, {transform_indices = @transform_1, window_bounds = array<i64: 8, 128>}]} {
    %c0 = arith.constant 0 : index
    %c0_0 = arith.constant 0 : index
    %0 = vector.load %arg1[%c0, %c0_0] : memref<8x128xf32, #tpu.memory_space<vmem>>, vector<8x128xf32>
    %cst = arith.constant dense<0xFF800000> : vector<8xf32>
    %1 = vector.multi_reduction <maximumf>, %0, %cst [1] : vector<8x128xf32> to vector<8xf32>
    %2 = vector.shape_cast %1 : vector<8xf32> to vector<8x1xf32>
    %3 = vector.broadcast %2 : vector<8x1xf32> to vector<8x128xf32>
    %4 = arith.subf %0, %3 : vector<8x128xf32>
    %5 = math.exp %4 : vector<8x128xf32>
    %cst_1 = arith.constant dense<0.000000e+00> : vector<8xf32>
    %6 = vector.multi_reduction <add>, %5, %cst_1 [1] : vector<8x128xf32> to vector<8xf32>
    %7 = vector.shape_cast %6 : vector<8xf32> to vector<8x1xf32>
    %8 = vector.broadcast %7 : vector<8x1xf32> to vector<8x128xf32>
    %9 = arith.addf %5, %8 : vector<8x128xf32>
    %c0_2 = arith.constant 0 : index
    %c0_3 = arith.constant 0 : index
    %10 = vector.load %arg2[%c0_2, %c0_3] : memref<8x128xf32, #tpu.memory_space<vmem>>, vector<8x128xf32>
    tpu.vector_store %arg2[%c0_2, %c0_3], %9 {strides = array<i32>} : memref<8x128xf32, #tpu.memory_space<vmem>>, vector<8x128xf32>,
    return
  }
  func.func @transform_0(%arg0: i32) -> (i32, i32) {
    %c0_i32 = arith.constant 0 : i32
    %c0_i32_0 = arith.constant 0 : i32
    return %arg0, %c0_i32 : i32, i32
  }
  func.func @transform_1(%arg0: i32) -> (i32, i32) {
    %c0_i32 = arith.constant 0 : i32
    %c0_i32_0 = arith.constant 0 : i32
    return %arg0, %c0_i32 : i32, i32
  }
}

</mosaic_0001>

<bundles_post_ra>
// kernel: tpu_custom_call.1
= control target key start
LH: loop header
LB: loop body
LE: loop exit
PB: predicated region body
PF: predicated region fallthrough
CT: control target
= control target key end

     0   :  { %6 = vsyncpa [#allocation3], 0  ;;  %s557_s0 = inlined_call_operand.hbm [shape: f32[16,128], index: 0, kind: input, shape index: {}]   ;;  %s558_s1 = inlined_call_operand.hbm [shape: f32[16,128], index: 1, kind: output, shape index: {}]  }
   0x1   :  { %8 = vsyncpa [#allocation3 + $0x1], 0 }
   0x2   :  { %9 = vsyncpa [#allocation4], 0 }
   0x3   :  { %11 = vsyncpa [#allocation4 + $0x1], 0  ;;  %s396_s6 = smov 0   ;;  %s398_s7 = smov 0  }
   0x4   :  { %s400_s8 = smov 0   ;;  %s402_s9 = smov 0  }
   0x5 LB: > { %s417_s10 = sadd.s32 4294967295, %s382_s9   ;;  %s226_s11 = sadd.s32 4294967294, %s382_s9   ;;  %s382_s9 = sphi %s402_s9, %s573_s9   ;;  %s378_s8 = sphi %s400_s8, %s572_s8   ;;  %s374_s7 = sphi %s398_s7, %s571_s7   ;;  %s370_s6 = sphi %s396_s6, %s570_s6  }
   0x6   : > { %s421_s12 = sadd.s32 1, %s382_s9   ;;  %s24_s13 = sadd.s32 1, %s378_s8 }
   0x7   : > { %s21_s14 = ssub.s32 %s382_s9, %s421_s12  ;;  %p31_p0 = scmp.ne.s32.totalorder %s378_s8, %s374_s7 }
   0x8   : > { %p22_p1 = scmp.eq.s32.totalorder %s21_s14, 0  ;;  %p32_p2 = scmp.eq.s32.totalorder %s382_s9, 0 }
   0x9   : > { %p37_p3 = scmp.ne.s32.totalorder %s374_s7, %s370_s6  ;;  %p38_p4 = scmp.eq.s32.totalorder %s417_s10, 0 }
   0xa   : > { %s433_s15 = scalar_select %p22_p1, %s378_s8, %s24_s13  }
   0xb   : > { %p435_p5 = por %p32_p2, %p31_p0  ;;  %p439_p6 = por %p38_p4, %p37_p3 }
   0xc   : > { %p61_p7 = scmp.eq.s32.totalorder %s417_s10, 1  ;;  %p67_p8 = scmp.eq.s32.totalorder %s226_s11, 1 }
   0xd   : > { %p250_p10 = scmp.lt.s32.totalorder %s382_s9, 2  ;;  %s87_s20 = sand.u32 1, %s378_s8  }
   0xe   : > { %p446_p11 = por %p61_p7, %p31_p0  ;;  %p450_p12 = por %p67_p8, %p37_p3 }
   0xf   : > { %s230_s21 = sshll.u32 %s382_s9, 7  ;;  %s229_s22 = sshll.u32 %s87_s20, 3 }
  0x10   : > { %s562_s18 = scalar_select %p446_p11, 1, 0 }
  0x11   : > { %s563_s19 = scalar_select %p450_p12, 1, 0 }
  0x12   : > { %s459_s25 = scalar_lea.hbm %s557_s0, %s230_s21  ;;  %s91_s26 = scalar_lea.vmem [#allocation2], %s229_s22 }
  0x13   : > { %s98_s27 = sshll.u32 %s91_s26, 4  ;;  %p463_p13 = pnand %p250_p10, %p435_p5  ;;  %s467_s27 = int_to_ptr.vmem [resolvable:$true] %s98_s27 }
  0x14   : > { %s88_s29 = scalar_lea.sflag [#allocation3], %s87_s20  ;;  %s286_s30 = scalar_lea.hbm %s459_s25, 128 }
  0x15   : > { %p287_p2 = scmp.ne.s32.totalorder %s459_s25, %s286_s30  ;;  %p288_p3 = pneg %p463_p13 }
  0x16   : > { %s291_s4 = scalar_lea.hbm %s557_s0, 256  ;;  %p292_p5 = scmp.lt.u32.totalorder %s459_s25, %s557_s0 }
  0x17   : > { %p289_p4 = pnand %p288_p3, %p287_p2  ;;  %p293_p8 = scmp.lt.u32.totalorder %s291_s4, %s286_s30 }
  0x18   : > { %p295_p9 = scmp.lt.u32.totalorder %s286_s30, %s459_s25 }
  0x19   : > { %p290_p7 = pneg %p289_p4  ;;  %p294_p10 = por %p293_p8, %p292_p5 }
  0x1b   : > { %p296_p0 = por %p295_p9, %p294_p10 }
  0x1d   : > { %p297_p1 = pnand %p296_p0, %p290_p7 }
  0x1f   : > { %300 = shalt.err (!%p297_p1)
}
  0x20   : > { %s301_s13 = scalar_lea.vmem %s467_s27, 128  ;;  %s384_s14 = smov [#allocation2]  }
  0x21   : > { %p302_p2 = scmp.ne.s32.totalorder %s467_s27, %s301_s13  ;;  %s306_s16 = sshll.u32 %s384_s14, 4  ;;  %s307_s16 = int_to_ptr.vmem [resolvable:$false] %s306_s16 }
  0x22   : > { %s308_s20 = scalar_lea.vmem %s307_s16, 256  ;;  %p309_p11 = scmp.lt.s32.totalorder %s467_s27, %s307_s16 }
  0x23   : > { %p304_p4 = pnand %p302_p2, %p288_p3  ;;  %p310_p5 = scmp.lt.s32.totalorder %s308_s20, %s301_s13 }
  0x25   : > { %p305_p12 = pneg %p304_p4  ;;  %p311_p8 = por %p310_p5, %p309_p11 }
  0x27   : > { %p312_p9 = pnand %p311_p8, %p305_p12 }
  0x29   : > { %315 = shalt.err (!%p312_p9)
}
  0x2a   : > { %245 = dma.hbm_to_vmem [thread:$0]  (!%p463_p13), %s459_s25, 128, %s467_s27, %s88_s29  }
  0x2b   : > { %p565_p0 = scmp.lt.s32.totalorder %s382_s9, 3  ;;  %p566_p1 = scmp.ge.s32.totalorder %s382_s9, 1 }
  0x2d   : > { %p104_p3 = pnand %p566_p1, %p565_p0 }
  0x2e   : > { %s501_s21 = sand.u32 (!%p104_p3), 1, %s374_s7  }
  0x2f   : > { %107 = sbr.rel (%p104_p3) target bundleno = 371 (0x173), region = 24  ;;  %s232_s22 = sshll.u32 (!%p104_p3), %s501_s21, 3 }
  0x30   : > { %s110_s23 = scalar_lea.sflag (!%p104_p3), [#allocation3], %s501_s21  ;;  %s113_s24 = scalar_lea.vmem (!%p104_p3), [#allocation2], %s232_s22 }
  0x36   : > { %361 = dma.done.wait (%p439_p6), %s110_s23, 128  }
  0x37   : > { %363 = vsyncadd (%p439_p6), %s110_s23, 4294967168  ;;  %v132_v0 = vld [vmem:[%s113_s24] sm:$0xff]  ;;  %s235_s25 = sshll.u32 %s417_s10, 7  ;;  %s131_s26 = scalar_lea.vmem [#allocation5], %s232_s22 }
  0x38   : > { %133 = vmax.xlane.f32.xlu0 %v132_v0  ;;  %s156_s27 = sshll.u32 %s131_s26, 4  ;;  %s513_s17 = scalar_lea.hbm %s558_s1, %s235_s25  ;;  %s515_s27 = int_to_ptr.vmem [resolvable:$true] %s156_s27 }
  0x39   : > { %s143_s30 = scalar_lea.sflag [#allocation4], %s501_s21  ;;  %s316_s2 = scalar_lea.vmem %s515_s27, 128 }
  0x3a   : > { %p317_p6 = scmp.ne.s32.totalorder %s515_s27, %s316_s2  ;;  %p567_p11 = scmp.ne.s32.totalorder %s562_s18, 0 }
  0x3b   : > { %s385_s10 = smov [#allocation5]  }
  0x3c   : > { %p318_p12 = pnand %p317_p6, %p567_p11  ;;  %s320_s3 = sshll.u32 %s385_s10, 4  ;;  %s321_s3 = int_to_ptr.vmem [resolvable:$false] %s320_s3 }
  0x3d   : > { %s322_s4 = scalar_lea.vmem %s321_s3, 256  ;;  %p323_p7 = scmp.lt.s32.totalorder %s515_s27, %s321_s3 }
  0x3e   : > { %p319_p13 = pneg %p318_p12  ;;  %p324_p10 = scmp.lt.s32.totalorder %s322_s4, %s316_s2 }
  0x40   : > { %p325_p2 = por %p324_p10, %p323_p7 }
  0x42   : > { %p326_p4 = pnand %p325_p2, %p319_p13 }
  0xc5   : > { %v134_v1 = vpop.xlane.xlu0 %133 }
  0xc6   : > { %v135_v2 = vsub.f32 %v132_v0, %v134_v1 }
  0xc8   : > { %v136_v3 = vmul.f32 1.442695, %v135_v2 }
  0xca   : > { %284 = vpow2.f32 %v136_v3 }
  0xd4   : > { %v285_v4 = vpop.eup %284 }
  0xd5   : > { %138 = vadd.xlane.f32.xlu0 %v285_v4 }
 0x162   : > { %v139_v5 = vpop.xlane.xlu0 %138 }
 0x163   : > { %v140_v6 = vadd.f32 %v285_v4, %v139_v5 }
 0x165   : > { %141 = vst [vmem:[%s131_s26] sm:$0xff] %v140_v6 }
 0x166   : > { %329 = shalt.err (!%p326_p4)
}
 0x167   : > { %s330_s5 = scalar_lea.hbm %s513_s17, 128  ;;  %s334_s14 = scalar_lea.hbm %s558_s1, 256 }
 0x168   : > { %p331_p5 = scmp.ne.s32.totalorder %s513_s17, %s330_s5  ;;  %p335_p0 = scmp.lt.u32.totalorder %s513_s17, %s558_s1 }
 0x169   : > { %p336_p1 = scmp.lt.u32.totalorder %s334_s14, %s330_s5  ;;  %p338_p6 = scmp.lt.u32.totalorder %s330_s5, %s513_s17 }
 0x16a   : > { %p332_p8 = pnand %p331_p5, %p567_p11 }
 0x16b   : > { %p337_p3 = por %p336_p1, %p335_p0 }
 0x16c   : > { %p333_p9 = pneg %p332_p8 }
 0x16d   : > { %p339_p12 = por %p338_p6, %p337_p3 }
 0x16f   : > { %p340_p13 = pnand %p339_p12, %p333_p9 }
 0x171   : > { %343 = shalt.err (!%p340_p13)
}
 0x172   : > { %240 = dma.vmem_to_hbm [thread:$0]  (%p567_p11), %s515_s27, 128, %s513_s17, %s143_s30  }
 0x173 PF: > { %s168_s21 = sand.u32 1, %s370_s6   ;;  %p568_p7 = scmp.ne.s32.totalorder %s563_s19, 0 }
 0x174   : > { %p569_p10 = scmp.ge.s32.totalorder %s382_s9, 2  ;;  %s169_s22 = scalar_lea.sflag [#allocation4], %s168_s21 }
 0x176   : > { %p247_p2 = pnand %p569_p10, %p568_p7 }
 0x178   : > { %365 = dma.done.wait (!%p247_p2), %s169_s22, 128  }
 0x179   : > { %367 = vsyncadd (!%p247_p2), %s169_s22, 4294967168  ;;  %p14_p4 = scmp.ge.s32.totalorder %s421_s12, 4   ;;  %s570_s6 = smov %s374_s7 }
 0x17a   : > { %s571_s7 = smov %s378_s8  ;;  %s572_s8 = smov %s433_s15 }
 0x17b   : > { %s573_s9 = smov %s421_s12  ;;  %16 = sbr.rel (!%p14_p4) target bundleno = 5 (0x5), region = 69 }
 0x182   :  { %174 = vsyncpa [#allocation3], 1 }
 0x183   :  { %176 = vsyncpa [#allocation3 + $0x1], 1 }
 0x184   :  { %177 = vsyncpa [#allocation4], 1 }
 0x185   :  { %179 = vsyncpa [#allocation4 + $0x1], 1 }

</bundles_post_ra>
